<compile_context>
chip_gen: v6e
topology: v6e:2x2x1
jax: 0.10.0
libtpu: 0.0.40
codegen_flags: <defaults>
</compile_context>

<pallas_src>
import math

import jax
import jax.numpy as jnp
from jax import lax
from jax.experimental import pallas as pl
from jax.experimental.pallas import tpu as pltpu

_SUBLANES = 8
_LANES = 128


def _mse_partial_kernel(fields_ref, targets_ref, out_ref, acc_ref):
    """Per-field sum of squared differences, accumulated at vreg granularity.

    fields_ref / targets_ref : (FB, ROWS_T, 128) VMEM input tiles
    out_ref                  : (FB, 1, 128) f32 VMEM output (lane-wise partial
                               sums, written once per field block in the epilogue)
    acc_ref                  : (FB, 8, 128) f32 VMEM scratch accumulator,
                               resident across the row (reduction) grid axis
    """
    r = pl.program_id(1)

    @pl.when(r == 0)
    def _init():
        acc_ref[...] = jnp.zeros_like(acc_ref)

    fb, rows_t, _ = fields_ref.shape
    n_slabs = rows_t // _SUBLANES

    # Walk the tile one 8-row sublane slab at a time: the squared difference
    # never materializes as a whole-tile VMEM temporary, and the accumulator
    # stays vreg-resident in the loop carry (pure VPU work, no cross-lane
    # traffic in the hot loop).
    def body(s, acc):
        off = pl.multiple_of(s * _SUBLANES, _SUBLANES)
        f = fields_ref[:, pl.ds(off, _SUBLANES), :].astype(jnp.float32)
        t = targets_ref[:, pl.ds(off, _SUBLANES), :].astype(jnp.float32)
        d = f - t
        return acc + d * d

    # Unroll enough to keep the LLO scheduler busy without blowing vreg budget
    # when many fields share a block.
    unroll = max(1, min(n_slabs, max(1, 16 // max(fb, 1))))
    acc_ref[...] = lax.fori_loop(0, n_slabs, body, acc_ref[...], unroll=unroll)

    # Epilogue: fold the 8 sublanes on the (otherwise idle) XLU once per field
    # block; the remaining 128-lane fold fuses with the tiny Kendall weighting
    # in the wrapper.
    @pl.when(r == pl.num_programs(1) - 1)
    def _epilogue():
        out_ref[...] = acc_ref[...].sum(axis=1, keepdims=True)


def _num_tensorcores():
    """2 TensorCores per chip on v7x (sharded via 'parallel' grid axes);
    1 on v5e/v6e."""
    try:
        kind = jax.devices()[0].device_kind.lower()
    except Exception:
        return 1
    return 2 if "v7" in kind else 1


def _vmem_capacity_bytes():
    try:
        cap = getattr(pltpu.get_tpu_info(), "vmem_capacity_bytes", None)
        if cap:
            return int(cap)
    except Exception:
        pass
    return 64 << 20  # conservative fallback: v7x has 64 MiB per TensorCore


def _round_up(x, m):
    return ((x + m - 1) // m) * m


def _choose_fields_per_block(n_fields, rows, itemsize, num_cores):
    """Field-block size for the 'parallel' grid axis.

    Single-TC chips (v5e/v6e): one field block -> fewest, fullest grid steps.
    Dual-TC chips (v7x): guarantee >= 2 programs on the parallel axis whenever
    the workload is non-trivial so both TensorCores stream from HBM.
    """
    if num_cores < 2 or n_fields < 2:
        return n_fields
    total_bytes = 2 * n_fields * rows * _LANES * itemsize
    if total_bytes < (512 << 10):   # tiny workload: a single grid step wins
        return n_fields
    if n_fields % 2 == 0:
        return n_fields // 2
    return 1                        # odd field count: one field per program


def _choose_row_tile(rows8, fb, itemsize, vmem_cap):
    """Largest multiple-of-8 row tile such that 2 inputs x 2 pipeline buffers
    (plus accumulator / temporaries headroom) fit the generation-aware budget."""
    budget = min(int(vmem_cap * 0.5), 32 << 20)
    per_buffer = max(budget // 6, _SUBLANES * _LANES * itemsize)
    rows_cap = max(_SUBLANES,
                   (per_buffer // (fb * _LANES * itemsize)) // _SUBLANES * _SUBLANES)
    return min(rows8, rows_cap)


def _vmem_limit_bytes(fb, rows_t, itemsize, vmem_cap):
    input_bufs = 2 * 2 * fb * rows_t * _LANES * itemsize  # 2 inputs x double-buffer
    acc_bytes = fb * _SUBLANES * _LANES * 4
    out_bufs = 2 * fb * 1 * _LANES * 4
    est = input_bufs + acc_bytes + out_bufs + (4 << 20)   # temporaries headroom
    return int(min(max(est, 32 << 20), int(vmem_cap * 0.75)))


def multi_head_loss_autotune(head_fields, head_targets, lambdas, log_sigmas):
    """head_fields / head_targets: (N, B, C, H, W); lambdas / log_sigmas: (N,).

    Returns (total_loss scalar float32, flat_head_losses (N,) float32).
    """
    assert head_fields.shape == head_targets.shape
    n_fields = head_fields.shape[0]
    per_field = math.prod(head_fields.shape[1:])
    itemsize = jnp.dtype(head_fields.dtype).itemsize

    num_cores = _num_tensorcores()
    vmem_cap = _vmem_capacity_bytes()

    rows = pl.cdiv(per_field, _LANES)
    rows8 = _round_up(rows, _SUBLANES)
    fb = _choose_fields_per_block(n_fields, rows8, itemsize, num_cores)
    rows_t = _choose_row_tile(rows8, fb, itemsize, vmem_cap)
    rows_padded = _round_up(rows8, rows_t)

    # Flatten each field to a lane-dense slab; zero-pad BOTH fields and targets
    # so the padding contributes exactly 0 to the sum of squared differences.
    pad = rows_padded * _LANES - per_field
    fields_2d = head_fields.reshape(n_fields, per_field)
    targets_2d = head_targets.reshape(n_fields, per_field)
    if pad:
        fields_2d = jnp.pad(fields_2d, ((0, 0), (0, pad)))
        targets_2d = jnp.pad(targets_2d, ((0, 0), (0, pad)))
    fields_flat = fields_2d.reshape(n_fields, rows_padded, _LANES)
    targets_flat = targets_2d.reshape(n_fields, rows_padded, _LANES)

    grid = (n_fields // fb, rows_padded // rows_t)

    partial = pl.pallas_call(
        _mse_partial_kernel,
        out_shape=jax.ShapeDtypeStruct((n_fields, 1, _LANES), jnp.float32),
        grid_spec=pltpu.PrefetchScalarGridSpec(
            num_scalar_prefetch=0,
            grid=grid,
            in_specs=[
                pl.BlockSpec((fb, rows_t, _LANES), lambda f, r: (f, r, 0)),
                pl.BlockSpec((fb, rows_t, _LANES), lambda f, r: (f, r, 0)),
            ],
            out_specs=pl.BlockSpec((fb, 1, _LANES), lambda f, r: (f, 0, 0)),
            scratch_shapes=[pltpu.VMEM((fb, _SUBLANES, _LANES), jnp.float32)],
        ),
        compiler_params=pltpu.CompilerParams(
            # Field axis is embarrassingly parallel (dual-TC sharding on v7x);
            # the row axis is the reduction (resident scratch accumulator).
            dimension_semantics=("parallel", "arbitrary"),
            vmem_limit_bytes=_vmem_limit_bytes(fb, rows_t, itemsize, vmem_cap),
        ),
    )(fields_flat, targets_flat)

    # Finish the tiny per-field lane fold + Kendall-et-al. uncertainty weighting
    # in plain JAX (N scalars; fuses into one tiny XLA op).
    flat_head_losses = jnp.sum(partial, axis=(1, 2)) * (1.0 / float(per_field))
    lambdas = lambdas.astype(jnp.float32)
    log_sigmas = log_sigmas.astype(jnp.float32)
    loss_values = lambdas * flat_head_losses * (0.5 * jnp.exp(-2.0 * log_sigmas))
    auto_reg = lambdas * log_sigmas
    total_loss = jnp.sum(loss_values) + jnp.sum(auto_reg)
    return total_loss, flat_head_losses


def _reference(head_fields, head_targets, lambdas, log_sigmas):
    n = head_fields.shape[0]
    f = head_fields.reshape(n, -1).astype(jnp.float32)
    t = head_targets.reshape(n, -1).astype(jnp.float32)
    flat = jnp.mean((f - t) ** 2, axis=1)
    loss_values = lambdas * flat / (2.0 * jnp.exp(log_sigmas) ** 2)
    auto_reg = lambdas * log_sigmas
    return jnp.sum(loss_values) + jnp.sum(auto_reg), flat


if __name__ == "__main__":
    key = jax.random.PRNGKey(0)
    k1, k2, k3 = jax.random.split(key, 3)

    # Small shapes consistent with the module: N=8 loss fields, each head
    # output is NCHW (B=2, C=4, H=16, W=16).
    N, B, C, H, W = 8, 2, 4, 16, 16
    head_fields = jax.random.normal(k1, (N, B, C, H, W), dtype=jnp.float32)
    head_targets = jax.random.normal(k2, (N, B, C, H, W), dtype=jnp.float32)

    # Parameters (mirroring __init__): lambdas default to 1.0 per field;
    # log_sigmas is a zero-initialized Parameter -- here perturbed slightly
    # (deterministically) so the weighting path is exercised nontrivially.
    lambdas = jnp.ones((N,), dtype=jnp.float32)
    log_sigmas = 0.1 * jax.random.normal(k3, (N,), dtype=jnp.float32)

    run = jax.jit(multi_head_loss_autotune)
    total_loss, flat_head_losses = run(head_fields, head_targets,
                                       lambdas, log_sigmas)
    jax.block_until_ready((total_loss, flat_head_losses))

    ref_total, ref_flat = _reference(head_fields, head_targets,
                                     lambdas, log_sigmas)
    assert jnp.allclose(total_loss, ref_total, rtol=1e-4, atol=1e-5)
    assert jnp.allclose(flat_head_losses, ref_flat, rtol=1e-4, atol=1e-5)

    print("KERNEL_OK")
</pallas_src>

<mosaic_0001>
module attributes {stable_mosaic.version = 11 : i64} {
  func.func @_mse_partial_kernel(%arg0: i32, %arg1: i32, %arg2: memref<8x16x128xf32, #tpu.memory_space<vmem>>, %arg3: memref<8x16x128xf32, #tpu.memory_space<vmem>>, %arg4: memref<8x1x128xf32, #tpu.memory_space<vmem>>, %arg5: memref<8x8x128xf32, #tpu.memory_space<vmem>>) attributes {dimension_semantics = [#tpu.dimension_semantics<parallel>, #tpu.dimension_semantics<arbitrary>], iteration_bounds = array<i64: 1, 1>, scalar_prefetch = 0 : i64, scratch_operands = 1 : i64, tpu.core_type = #tpu.core_type<tc>, window_params = [{transform_indices = @transform_0, window_bounds = array<i64: 8, 16, 128>}, {transform_indices = @transform_1, window_bounds = array<i64: 8, 16, 128>}, {transform_indices = @transform_2, window_bounds = array<i64: 8, 1, 128>}]} {
    %c0_i32 = arith.constant 0 : i32
    %0 = arith.cmpi eq, %arg1, %c0_i32 : i32
    %1 = arith.extui %0 : i1 to i32
    %c0_i32_0 = arith.constant 0 : i32
    %2 = arith.cmpi ne, %1, %c0_i32_0 : i32
    scf.if %2 {
      %cst = arith.constant 0.000000e+00 : f32
      %26 = vector.broadcast %cst : f32 to vector<8x8x128xf32>
      %c0_18 = arith.constant 0 : index
      %c0_19 = arith.constant 0 : index
      %c0_20 = arith.constant 0 : index
      %27 = vector.load %arg5[%c0_18, %c0_19, %c0_20] : memref<8x8x128xf32, #tpu.memory_space<vmem>>, vector<8x8x128xf32>
      tpu.vector_store %arg5[%c0_18, %c0_19, %c0_20], %26 {strides = array<i32>} : memref<8x8x128xf32, #tpu.memory_space<vmem>>, vector<8x8x128xf32>,
    } else {
    }
    %c0 = arith.constant 0 : index
    %c0_1 = arith.constant 0 : index
    %c0_2 = arith.constant 0 : index
    %3 = vector.load %arg5[%c0, %c0_1, %c0_2] : memref<8x8x128xf32, #tpu.memory_space<vmem>>, vector<8x8x128xf32>
    %c0_i32_3 = arith.constant 0 : i32
    %c8_i32 = arith.constant 8 : i32
    %4 = arith.muli %c0_i32_3, %c8_i32 : i32
    %5 = tpu.assume_multiple %4, 8 : i32
    %c0_4 = arith.constant 0 : index
    %6 = arith.index_cast %5 : i32 to index
    %c0_5 = arith.constant 0 : index
    %7 = vector.load %arg2[%c0_4, %6, %c0_5] : memref<8x16x128xf32, #tpu.memory_space<vmem>>, vector<8x8x128xf32>
    %c0_6 = arith.constant 0 : index
    %8 = arith.index_cast %5 : i32 to index
    %c0_7 = arith.constant 0 : index
    %9 = vector.load %arg3[%c0_6, %8, %c0_7] : memref<8x16x128xf32, #tpu.memory_space<vmem>>, vector<8x8x128xf32>
    %10 = arith.subf %7, %9 : vector<8x8x128xf32>
    %11 = arith.mulf %10, %10 : vector<8x8x128xf32>
    %12 = arith.addf %3, %11 : vector<8x8x128xf32>
    %c1_i32 = arith.constant 1 : i32
    %c8_i32_8 = arith.constant 8 : i32
    %13 = arith.muli %c1_i32, %c8_i32_8 : i32
    %14 = tpu.assume_multiple %13, 8 : i32
    %c0_9 = arith.constant 0 : index
    %15 = arith.index_cast %14 : i32 to index
    %c0_10 = arith.constant 0 : index
    %16 = vector.load %arg2[%c0_9, %15, %c0_10] : memref<8x16x128xf32, #tpu.memory_space<vmem>>, vector<8x8x128xf32>
    %c0_11 = arith.constant 0 : index
    %17 = arith.index_cast %14 : i32 to index
    %c0_12 = arith.constant 0 : index
    %18 = vector.load %arg3[%c0_11, %17, %c0_12] : memref<8x16x128xf32, #tpu.memory_space<vmem>>, vector<8x8x128xf32>
    %19 = arith.subf %16, %18 : vector<8x8x128xf32>
    %20 = arith.mulf %19, %19 : vector<8x8x128xf32>
    %21 = arith.addf %12, %20 : vector<8x8x128xf32>
    %c2_i32 = arith.constant 2 : i32
    %c0_13 = arith.constant 0 : index
    %c0_14 = arith.constant 0 : index
    %c0_15 = arith.constant 0 : index
    %22 = vector.load %arg5[%c0_13, %c0_14, %c0_15] : memref<8x8x128xf32, #tpu.memory_space<vmem>>, vector<8x8x128xf32>
    tpu.vector_store %arg5[%c0_13, %c0_14, %c0_15], %21 {strides = array<i32>} : memref<8x8x128xf32, #tpu.memory_space<vmem>>, vector<8x8x128xf32>,
    %c0_i32_16 = arith.constant 0 : i32
    %23 = arith.cmpi eq, %arg1, %c0_i32_16 : i32
    %24 = arith.extui %23 : i1 to i32
    %c0_i32_17 = arith.constant 0 : i32
    %25 = arith.cmpi ne, %24, %c0_i32_17 : i32
    scf.if %25 {
      %c0_18 = arith.constant 0 : index
      %c0_19 = arith.constant 0 : index
      %c0_20 = arith.constant 0 : index
      %26 = vector.load %arg5[%c0_18, %c0_19, %c0_20] : memref<8x8x128xf32, #tpu.memory_space<vmem>>, vector<8x8x128xf32>
      %cst = arith.constant dense<0.000000e+00> : vector<8x128xf32>
      %27 = vector.multi_reduction <add>, %26, %cst [1] : vector<8x8x128xf32> to vector<8x128xf32>
      %28 = vector.shape_cast %27 : vector<8x128xf32> to vector<8x1x128xf32>
      %c0_21 = arith.constant 0 : index
      %c0_22 = arith.constant 0 : index
      %c0_23 = arith.constant 0 : index
      %29 = vector.load %arg4[%c0_21, %c0_22, %c0_23] : memref<8x1x128xf32, #tpu.memory_space<vmem>>, vector<8x1x128xf32>
      tpu.vector_store %arg4[%c0_21, %c0_22, %c0_23], %28 {strides = array<i32>} : memref<8x1x128xf32, #tpu.memory_space<vmem>>, vector<8x1x128xf32>,
    } else {
    }
    return
  }
  func.func @transform_0(%arg0: i32, %arg1: i32) -> (i32, i32, i32) {
    %c0_i32 = arith.constant 0 : i32
    %c0_i32_0 = arith.constant 0 : i32
    return %arg0, %arg1, %c0_i32 : i32, i32, i32
  }
  func.func @transform_1(%arg0: i32, %arg1: i32) -> (i32, i32, i32) {
    %c0_i32 = arith.constant 0 : i32
    %c0_i32_0 = arith.constant 0 : i32
    return %arg0, %arg1, %c0_i32 : i32, i32, i32
  }
  func.func @transform_2(%arg0: i32, %arg1: i32) -> (i32, i32, i32) {
    %c0_i32 = arith.constant 0 : i32
    %c0_i32_0 = arith.constant 0 : i32
    %c0_i32_1 = arith.constant 0 : i32
    return %arg0, %c0_i32, %c0_i32_0 : i32, i32, i32
  }
}

</mosaic_0001>

<bundles_post_ra>
// kernel: multi_head_loss_autotune.1
= control target key start
LH: loop header
LB: loop body
LE: loop exit
PB: predicated region body
PF: predicated region fallthrough
CT: control target
= control target key end

     0   :  { %s343_s0 = inlined_call_operand.vmem [shape: f32[8,16,128], index: 0, kind: input, shape index: {}]   ;;  %s344_s1 = inlined_call_operand.vmem [shape: f32[8,16,128], index: 1, kind: input, shape index: {}]   ;;  %s345_s2 = inlined_call_operand.vmem [shape: f32[8,1,128], index: 2, kind: output, shape index: {}]  }
   0x1   :  { %v31_v0 = vld [vmem:[%s343_s0] sm:$0xff]  ;;  %v192_v2 = vld [vmem:[%s343_s0 + $0x8] sm:$0xff]  ;;  %v32_v5 = vld [vmem:[%s343_s0 + $0x10] sm:$0xff] }
   0x2   :  { %v39_v1 = vld [vmem:[%s344_s1] sm:$0xff]  ;;  %v200_v4 = vld [vmem:[%s344_s1 + $0x8] sm:$0xff]  ;;  %v40_v6 = vld [vmem:[%s344_s1 + $0x10] sm:$0xff] }
   0x3   :  { %v47_v3 = vsub.f32 %v31_v0, %v39_v1  ;;  %v89_v7 = vsub.f32 %v192_v2, %v200_v4  ;;  %v48_v8 = vsub.f32 %v32_v5, %v40_v6  ;;  %v193_v9 = vld [vmem:[%s343_s0 + $0x18] sm:$0xff]  ;;  %v33_v11 = vld [vmem:[%s343_s0 + $0x20] sm:$0xff]  ;;  %v194_v15 = vld [vmem:[%s343_s0 + $0x28] sm:$0xff] }
   0x4   :  { %v201_v10 = vld [vmem:[%s344_s1 + $0x18] sm:$0xff]  ;;  %v41_v14 = vld [vmem:[%s344_s1 + $0x20] sm:$0xff]  ;;  %v202_v16 = vld [vmem:[%s344_s1 + $0x28] sm:$0xff] }
   0x5   :  { %v55_v12 = vmul.f32 %v47_v3, %v47_v3  ;;  %v90_v13 = vsub.f32 %v193_v9, %v201_v10  ;;  %v97_v17 = vmul.f32 %v89_v7, %v89_v7  ;;  %v56_v18 = vmul.f32 %v48_v8, %v48_v8  ;;  %v34_v21 = vld [vmem:[%s343_s0 + $0x30] sm:$0xff]  ;;  %v195_v23 = vld [vmem:[%s343_s0 + $0x38] sm:$0xff]  ;;  %v35_v27 = vld [vmem:[%s343_s0 + $0x40] sm:$0xff] }
   0x6   :  { %v49_v19 = vsub.f32 %v33_v11, %v41_v14  ;;  %v91_v20 = vsub.f32 %v194_v15, %v202_v16  ;;  %v42_v22 = vld [vmem:[%s344_s1 + $0x30] sm:$0xff]  ;;  %v203_v26 = vld [vmem:[%s344_s1 + $0x38] sm:$0xff]  ;;  %v43_v28 = vld [vmem:[%s344_s1 + $0x40] sm:$0xff] }
   0x7   :  { %v98_v24 = vmul.f32 %v90_v13, %v90_v13  ;;  %v50_v25 = vsub.f32 %v34_v21, %v42_v22  ;;  %v105_v29 = vadd.f32 %v97_v17, %v55_v12  ;;  %v92_v32 = vsub.f32 %v195_v23, %v203_v26  ;;  %v196_v33 = vld [vmem:[%s343_s0 + $0x48] sm:$0xff]  ;;  %v36_v35 = vld [vmem:[%s343_s0 + $0x50] sm:$0xff]  ;;  %v197_v41 = vld [vmem:[%s343_s0 + $0x58] sm:$0xff] }
   0x8   :  { %v57_v30 = vmul.f32 %v49_v19, %v49_v19  ;;  %v99_v31 = vmul.f32 %v91_v20, %v91_v20  ;;  %v204_v34 = vld [vmem:[%s344_s1 + $0x48] sm:$0xff]  ;;  %v51_v38 = vsub.f32 %v35_v27, %v43_v28  ;;  %v44_v40 = vld [vmem:[%s344_s1 + $0x50] sm:$0xff]  ;;  %v205_v42 = vld [vmem:[%s344_s1 + $0x58] sm:$0xff] }
   0x9   :  { %v106_v36 = vadd.f32 %v98_v24, %v56_v18  ;;  %v58_v37 = vmul.f32 %v50_v25, %v50_v25  ;;  %v93_v39 = vsub.f32 %v196_v33, %v204_v34  ;;  %v132_v43 = vrot.slane %v105_v29, 4  ;;  %v37_v47 = vld [vmem:[%s343_s0 + $0x60] sm:$0xff]  ;;  %v198_v53 = vld [vmem:[%s343_s0 + $0x68] sm:$0xff]  ;;  %v38_v3 = vld [vmem:[%s343_s0 + $0x70] sm:$0xff] }
   0xa   :  { %v107_v44 = vadd.f32 %v99_v31, %v57_v30  ;;  %v100_v45 = vmul.f32 %v92_v32, %v92_v32  ;;  %v52_v46 = vsub.f32 %v36_v35, %v44_v40  ;;  %v45_v48 = vld [vmem:[%s344_s1 + $0x60] sm:$0xff]  ;;  %v59_v50 = vmul.f32 %v51_v38, %v51_v38  ;;  %v206_v54 = vld [vmem:[%s344_s1 + $0x68] sm:$0xff]  ;;  %v46_v4 = vld [vmem:[%s344_s1 + $0x70] sm:$0xff] }
   0xb   :  { %v138_v49 = vrot.slane %v106_v36, 4  ;;  %v101_v51 = vmul.f32 %v93_v39, %v93_v39  ;;  %v94_v52 = vsub.f32 %v197_v41, %v205_v42  ;;  %v133_v55 = vadd.f32 %v132_v43, %v105_v29  ;;  %v199_v21 = vld [vmem:[%s343_s0 + $0x78] sm:$0xff] }
   0xc   :  { %v144_v56 = vrot.slane %v107_v44, 4  ;;  %v108_v57 = vadd.f32 %v100_v45, %v58_v37  ;;  %v60_v58 = vmul.f32 %v52_v46, %v52_v46  ;;  %v53_v62 = vsub.f32 %v37_v47, %v45_v48  ;;  %v207_v22 = vld [vmem:[%s344_s1 + $0x78] sm:$0xff] }
   0xd   :  { %v139_v59 = vadd.f32 %v138_v49, %v106_v36  ;;  %v109_v60 = vadd.f32 %v101_v51, %v59_v50  ;;  %v102_v61 = vmul.f32 %v94_v52, %v94_v52  ;;  %v134_v63 = vrot.slane %v133_v55, 2 }
   0xe   :  { %v145_v0 = vadd.f32 %v144_v56, %v107_v44  ;;  %v150_v1 = vrot.slane %v108_v57, 4  ;;  %v95_v2 = vsub.f32 %v198_v53, %v206_v54  ;;  %v61_v8 = vmul.f32 %v53_v62, %v53_v62 }
   0xf   :  { %v140_v5 = vrot.slane %v139_v59, 2  ;;  %v156_v6 = vrot.slane %v109_v60, 4  ;;  %v110_v7 = vadd.f32 %v102_v61, %v60_v58  ;;  %v135_v9 = vadd.f32 %v134_v63, %v133_v55 }
  0x10   :  { %v146_v10 = vrot.slane %v145_v0, 2  ;;  %v151_v11 = vadd.f32 %v150_v1, %v108_v57  ;;  %v103_v12 = vmul.f32 %v95_v2, %v95_v2  ;;  %v54_v16 = vsub.f32 %v38_v3, %v46_v4 }
  0x11   :  { %v141_v13 = vadd.f32 %v140_v5, %v139_v59  ;;  %v157_v14 = vadd.f32 %v156_v6, %v109_v60  ;;  %v162_v15 = vrot.slane %v110_v7, 4  ;;  %v136_v17 = vrot.slane %v135_v9, 1 }
  0x12   :  { %v147_v18 = vadd.f32 %v146_v10, %v145_v0  ;;  %v152_v19 = vrot.slane %v151_v11, 2  ;;  %v111_v20 = vadd.f32 %v103_v12, %v61_v8  ;;  %v62_v26 = vmul.f32 %v54_v16, %v54_v16 }
  0x13   :  { %v142_v23 = vrot.slane %v141_v13, 1  ;;  %v158_v24 = vrot.slane %v157_v14, 2  ;;  %v163_v25 = vadd.f32 %v162_v15, %v110_v7  ;;  %v137_v27 = vadd.f32 %v136_v17, %v135_v9 }
  0x14   :  { %v148_v28 = vrot.slane %v147_v18, 1  ;;  %v153_v29 = vadd.f32 %v152_v19, %v151_v11  ;;  %v168_v30 = vrot.slane %v111_v20, 4  ;;  %v96_v34 = vsub.f32 %v199_v21, %v207_v22 }
  0x15   :  { %v143_v31 = vadd.f32 %v142_v23, %v141_v13  ;;  %v159_v32 = vadd.f32 %v158_v24, %v157_v14  ;;  %v164_v33 = vrot.slane %v163_v25, 2  ;;  %180 = vst [vmem:[%s345_s2] sm:$0x1] %v137_v27 }
  0x16   :  { %v149_v35 = vadd.f32 %v148_v28, %v147_v18  ;;  %v154_v36 = vrot.slane %v153_v29, 1  ;;  %v169_v37 = vadd.f32 %v168_v30, %v111_v20  ;;  %v104_v40 = vmul.f32 %v96_v34, %v96_v34 }
  0x17   :  { %181 = vst [vmem:[%s345_s2 + $0x1] sm:$0x1] %v143_v31  ;;  %v160_v38 = vrot.slane %v159_v32, 1  ;;  %v165_v39 = vadd.f32 %v164_v33, %v163_v25 }
  0x18   :  { %182 = vst [vmem:[%s345_s2 + $0x2] sm:$0x1] %v149_v35  ;;  %v155_v41 = vadd.f32 %v154_v36, %v153_v29  ;;  %v170_v42 = vrot.slane %v169_v37, 2  ;;  %v112_v45 = vadd.f32 %v104_v40, %v62_v26 }
  0x19   :  { %v161_v43 = vadd.f32 %v160_v38, %v159_v32  ;;  %v166_v44 = vrot.slane %v165_v39, 1 }
  0x1a   :  { %183 = vst [vmem:[%s345_s2 + $0x3] sm:$0x1] %v155_v41  ;;  %v171_v46 = vadd.f32 %v170_v42, %v169_v37  ;;  %v174_v48 = vrot.slane %v112_v45, 4 }
  0x1b   :  { %184 = vst [vmem:[%s345_s2 + $0x4] sm:$0x1] %v161_v43  ;;  %v167_v47 = vadd.f32 %v166_v44, %v165_v39 }
  0x1c   :  { %v172_v49 = vrot.slane %v171_v46, 1  ;;  %v175_v50 = vadd.f32 %v174_v48, %v112_v45 }
  0x1d   :  { %185 = vst [vmem:[%s345_s2 + $0x5] sm:$0x1] %v167_v47 }
  0x1e   :  { %v173_v51 = vadd.f32 %v172_v49, %v171_v46  ;;  %v176_v52 = vrot.slane %v175_v50, 2 }
  0x20   :  { %186 = vst [vmem:[%s345_s2 + $0x6] sm:$0x1] %v173_v51  ;;  %v177_v53 = vadd.f32 %v176_v52, %v175_v50 }
  0x22   :  { %v178_v54 = vrot.slane %v177_v53, 1 }
  0x24   :  { %v179_v55 = vadd.f32 %v178_v54, %v177_v53 }
  0x26   :  { %187 = vst [vmem:[%s345_s2 + $0x7] sm:$0x1] %v179_v55 }

</bundles_post_ra>
